<compile_context>
chip_gen: v7x
topology: tpu7x:2x2x1
jax: 0.10.0
libtpu: 0.0.40
codegen_flags: <defaults>
</compile_context>

<pallas_src>
import functools
import math

import jax
import jax.numpy as jnp
from jax.experimental import pallas as pl
from jax.experimental.pallas import tpu as pltpu


def _round_up(n, m):
    return ((n + m - 1) // m) * m


def _vdb_kernel(x_ref, eps_ref,
                w1_ref, b1_ref, w23_ref, b23_ref,
                w4_ref, b4_ref, w5t_ref, b5_ref,
                mu_ref, logvar_ref, prob_ref,
                *, z_size, matmul_dtype):
    x = x_ref[...]
    eps = eps_ref[...]

    # encoder: fc1 + fused fc2/fc3 head -> [mu | logvar] in a single MXU pass
    h = jnp.tanh(
        jnp.dot(x.astype(matmul_dtype), w1_ref[...],
                preferred_element_type=jnp.float32) + b1_ref[...]
    )
    ml = jnp.dot(h.astype(matmul_dtype), w23_ref[...],
                 preferred_element_type=jnp.float32) + b23_ref[...]
    mu = ml[:, :z_size]
    logvar = ml[:, z_size:]

    # reparameterize (f32 on the VPU/EUP): z = mu + exp(logvar/2) * eps
    z = mu + jnp.exp(logvar * 0.5) * eps

    # discriminator: fc4 + width-1 fc5 head + sigmoid
    h2 = jnp.tanh(
        jnp.dot(z.astype(matmul_dtype), w4_ref[...],
                preferred_element_type=jnp.float32) + b4_ref[...]
    )
    # N=1 head: VPU multiply + lane reduction instead of a width-1 MXU matmul
    logit = jnp.sum(h2 * w5t_ref[...], axis=-1, keepdims=True) + b5_ref[...]
    # exact sigmoid via a single EUP tanh: sigmoid(x) = 0.5 * (tanh(x/2) + 1)
    prob = 0.5 * (jnp.tanh(0.5 * logit) + 1.0)

    mu_ref[...] = mu
    logvar_ref[...] = logvar
    prob_ref[...] = prob


def prepare_vdb_params(p, *, matmul_dtype=jnp.bfloat16):
    """One-time parameter prep, hoisted out of the per-call path.

    * fc2/fc3 fused into one (H, 2Z) head + (1, 2Z) bias,
    * fc5 weight pre-transposed to (1, H) for the VPU head,
    * MXU-bound weights cast to `matmul_dtype` (bf16 recommended on v6e/v7x,
      jnp.float32 for an exact path).  Biases and w5t stay f32.
    """
    md = jnp.dtype(matmul_dtype)
    return dict(
        w1=p["w1"].astype(md),
        b1=p["b1"],
        w23=jnp.concatenate([p["w2"], p["w3"]], axis=1).astype(md),
        b23=jnp.concatenate([p["b2"], p["b3"]], axis=1),
        w4=p["w4"].astype(md),
        b4=p["b4"],
        w5t=p["w5"].T,            # (1, H), f32 — consumed by the VPU, not the MXU
        b5=p["b5"],
    )


def vdb_forward(x, eps, prepared, *, batch_tile=2048):
    """x: (B, num_inputs) f32; eps: (B, z_size) f32; prepared: prepare_vdb_params()."""
    B, num_inputs = x.shape
    H = prepared["w1"].shape[1]
    Z = prepared["w23"].shape[1] // 2
    matmul_dtype = prepared["w1"].dtype

    # Batch tile: fewer/fatter steps (per-step overhead dominates this tiny
    # per-row workload), but cap so that batches bigger than one tile always
    # give >= 2 grid steps (keeps both v7x TensorCores busy). 8-aligned for f32.
    TB = min(batch_tile, _round_up(pl.cdiv(B, 2), 8))
    if TB >= B:
        TB = B                       # single full-extent block for small batches
    grid = (pl.cdiv(B, TB),)

    # Chip-aware VMEM cap (v7x has only 64 MiB physical per TC).
    try:
        vmem_cap = int(pltpu.get_tpu_info().vmem_capacity_bytes)
    except Exception:
        vmem_cap = 64 << 20
    vmem_budget_cap = int(0.75 * vmem_cap)

    def _build(single_buffer_weights):
        def act_spec(last):
            return pl.BlockSpec((TB, last), lambda i: (i, 0))

        def resident_spec(shape):
            if single_buffer_weights:
                # Block index never changes -> no point double-buffering.
                return pl.BlockSpec(shape, lambda i: (0, 0),
                                    pipeline_mode=pl.Buffered(buffer_count=1))
            return pl.BlockSpec(shape, lambda i: (0, 0))

        in_specs = [
            act_spec(num_inputs),            # x       (pipelined over batch)
            act_spec(Z),                     # eps     (pipelined over batch)
            resident_spec((num_inputs, H)),  # w1
            resident_spec((1, H)),           # b1
            resident_spec((H, 2 * Z)),       # w23
            resident_spec((1, 2 * Z)),       # b23
            resident_spec((Z, H)),           # w4
            resident_spec((1, H)),           # b4
            resident_spec((1, H)),           # w5t
            resident_spec((1, 1)),           # b5
        ]
        out_specs = [
            pl.BlockSpec((TB, Z), lambda i: (i, 0)),   # mu
            pl.BlockSpec((TB, Z), lambda i: (i, 0)),   # logvar
            pl.BlockSpec((TB, 1), lambda i: (i, 0)),   # prob
        ]
        out_shape = (
            jax.ShapeDtypeStruct((B, Z), jnp.float32),
            jax.ShapeDtypeStruct((B, Z), jnp.float32),
            jax.ShapeDtypeStruct((B, 1), jnp.float32),
        )

        # VMEM budget: weights x1 (x2 if double-buffered fallback) +
        # double-buffered input and output tiles + headroom.
        wsize = jnp.dtype(matmul_dtype).itemsize
        w_bytes = ((num_inputs * H + H * 2 * Z + Z * H) * wsize
                   + (H + 2 * Z + H + H + 1) * 4)       # biases + w5t (f32)
        w_bytes *= 1 if single_buffer_weights else 2
        act_bytes = 2 * TB * (num_inputs + Z) * x.dtype.itemsize
        out_bytes = 2 * TB * (2 * Z + 1) * 4
        vmem_limit = int(min(max(w_bytes + act_bytes + out_bytes + (2 << 20),
                                 16 << 20),
                             vmem_budget_cap))

        return pl.pallas_call(
            functools.partial(_vdb_kernel, z_size=Z, matmul_dtype=matmul_dtype),
            out_shape=out_shape,
            grid=grid,
            in_specs=in_specs,
            out_specs=out_specs,
            compiler_params=pltpu.CompilerParams(
                dimension_semantics=("parallel",),   # megacore sharding on v7x
                vmem_limit_bytes=vmem_limit,
            ),
        )

    args = (x, eps,
            prepared["w1"], prepared["b1"], prepared["w23"], prepared["b23"],
            prepared["w4"], prepared["b4"], prepared["w5t"], prepared["b5"])

    try:
        mu, logvar, prob = _build(True)(*args)
    except Exception:
        # Fallback if this jax/Mosaic build rejects pl.Buffered(1) on a
        # BlockSpec: default 2-deep buffering (weights are tiny anyway).
        mu, logvar, prob = _build(False)(*args)

    return prob, mu, logvar


def init_vdb_params(key, num_inputs, hidden_size, z_size):
    """Deterministic init mimicking nn.Linear default (uniform +/- 1/sqrt(fan_in)).
    fc5 weight scaled by 0.1, fc5 bias zeroed (as in the module's __init__)."""
    def linear(k, fan_in, fan_out):
        kw, kb = jax.random.split(k)
        bound = 1.0 / math.sqrt(fan_in)
        w = jax.random.uniform(kw, (fan_in, fan_out), jnp.float32, -bound, bound)
        b = jax.random.uniform(kb, (1, fan_out), jnp.float32, -bound, bound)
        return w, b

    k1, k2, k3, k4, k5 = jax.random.split(key, 5)
    w1, b1 = linear(k1, num_inputs, hidden_size)
    w2, b2 = linear(k2, hidden_size, z_size)
    w3, b3 = linear(k3, hidden_size, z_size)
    w4, b4 = linear(k4, z_size, hidden_size)
    w5, b5 = linear(k5, hidden_size, 1)
    w5 = w5 * 0.1
    b5 = b5 * 0.0
    return dict(w1=w1, b1=b1, w2=w2, b2=b2, w3=w3, b3=b3,
                w4=w4, b4=b4, w5=w5, b5=b5)


def vdb_reference(x, eps, p):
    """Pure-JAX f32 reference matching the PyTorch module."""
    h = jnp.tanh(x @ p["w1"] + p["b1"])
    mu = h @ p["w2"] + p["b2"]
    logvar = h @ p["w3"] + p["b3"]
    z = mu + jnp.exp(logvar * 0.5) * eps
    h2 = jnp.tanh(z @ p["w4"] + p["b4"])
    prob = jax.nn.sigmoid(h2 @ p["w5"] + p["b5"])
    return prob, mu, logvar


if __name__ == "__main__":
    # small shapes consistent with the module: x is (batch, num_inputs)
    batch = 8
    num_inputs = 16
    hidden_size = 32
    z_size = 8

    key = jax.random.PRNGKey(0)
    k_params, k_x, k_eps, k_x2, k_eps2 = jax.random.split(key, 5)

    raw = init_vdb_params(k_params, num_inputs, hidden_size, z_size)
    x = jax.random.normal(k_x, (batch, num_inputs), jnp.float32)
    # eps drawn outside the kernel (corresponds to torch.randn_like(std))
    eps = jax.random.normal(k_eps, (batch, z_size), jnp.float32)

    prob_r, mu_r, logvar_r = vdb_reference(x, eps, raw)

    # --- exact path (f32 MXU operands): verifies kernel logic tightly ---
    p_f32 = prepare_vdb_params(raw, matmul_dtype=jnp.float32)
    prob, mu, logvar = vdb_forward(x, eps, p_f32)
    jax.block_until_ready((prob, mu, logvar))
    assert prob.shape == (batch, 1) and mu.shape == (batch, z_size) \
        and logvar.shape == (batch, z_size)
    assert jnp.allclose(prob, prob_r, atol=1e-5, rtol=1e-5)
    assert jnp.allclose(mu, mu_r, atol=1e-5, rtol=1e-5)
    assert jnp.allclose(logvar, logvar_r, atol=1e-5, rtol=1e-5)

    # --- fast path (bf16 MXU operands, recommended on v6e/v7x) ---
    p_bf16 = prepare_vdb_params(raw, matmul_dtype=jnp.bfloat16)
    prob_b, mu_b, logvar_b = vdb_forward(x, eps, p_bf16)
    jax.block_until_ready((prob_b, mu_b, logvar_b))
    assert jnp.allclose(prob_b, prob_r, atol=1e-2, rtol=1e-2)
    assert jnp.allclose(mu_b, mu_r, atol=1e-2, rtol=1e-2)
    assert jnp.allclose(logvar_b, logvar_r, atol=1e-2, rtol=1e-2)

    # --- multi-tile path: grid >= 2 steps (megacore split + tail-tile mask) ---
    big_b = 1000
    xb = jax.random.normal(k_x2, (big_b, num_inputs), jnp.float32)
    epsb = jax.random.normal(k_eps2, (big_b, z_size), jnp.float32)
    prob2, mu2, logvar2 = vdb_forward(xb, epsb, p_f32)
    jax.block_until_ready((prob2, mu2, logvar2))
    prob2_r, mu2_r, logvar2_r = vdb_reference(xb, epsb, raw)
    assert jnp.allclose(prob2, prob2_r, atol=1e-4, rtol=1e-4)
    assert jnp.allclose(mu2, mu2_r, atol=1e-4, rtol=1e-4)
    assert jnp.allclose(logvar2, logvar2_r, atol=1e-4, rtol=1e-4)

    print("KERNEL_OK")
</pallas_src>

<mosaic_0001>
module attributes {stable_mosaic.version = 11 : i64} {
  func.func @_vdb_kernel(%arg0: i32, %arg1: memref<8x16xf32, #tpu.memory_space<vmem>>, %arg2: memref<8x8xf32, #tpu.memory_space<vmem>>, %arg3: memref<16x32xf32, #tpu.memory_space<vmem>>, %arg4: memref<1x32xf32, #tpu.memory_space<vmem>>, %arg5: memref<32x16xf32, #tpu.memory_space<vmem>>, %arg6: memref<1x16xf32, #tpu.memory_space<vmem>>, %arg7: memref<8x32xf32, #tpu.memory_space<vmem>>, %arg8: memref<1x32xf32, #tpu.memory_space<vmem>>, %arg9: memref<1x32xf32, #tpu.memory_space<vmem>>, %arg10: memref<1x1xf32, #tpu.memory_space<vmem>>, %arg11: memref<8x8xf32, #tpu.memory_space<vmem>>, %arg12: memref<8x8xf32, #tpu.memory_space<vmem>>, %arg13: memref<8x1xf32, #tpu.memory_space<vmem>>) attributes {dimension_semantics = [#tpu.dimension_semantics<parallel>], iteration_bounds = array<i64: 1>, scalar_prefetch = 0 : i64, scratch_operands = 0 : i64, tpu.core_type = #tpu.core_type<tc>, window_params = [{transform_indices = @transform_0, window_bounds = array<i64: 8, 16>}, {transform_indices = @transform_1, window_bounds = array<i64: 8, 8>}, {pipeline_mode = #tpu.pipeline_mode<synchronous>, transform_indices = @transform_2, window_bounds = array<i64: 16, 32>}, {pipeline_mode = #tpu.pipeline_mode<synchronous>, transform_indices = @transform_3, window_bounds = array<i64: 1, 32>}, {pipeline_mode = #tpu.pipeline_mode<synchronous>, transform_indices = @transform_4, window_bounds = array<i64: 32, 16>}, {pipeline_mode = #tpu.pipeline_mode<synchronous>, transform_indices = @transform_5, window_bounds = array<i64: 1, 16>}, {pipeline_mode = #tpu.pipeline_mode<synchronous>, transform_indices = @transform_6, window_bounds = array<i64: 8, 32>}, {pipeline_mode = #tpu.pipeline_mode<synchronous>, transform_indices = @transform_7, window_bounds = array<i64: 1, 32>}, {pipeline_mode = #tpu.pipeline_mode<synchronous>, transform_indices = @transform_8, window_bounds = array<i64: 1, 32>}, {pipeline_mode = #tpu.pipeline_mode<synchronous>, transform_indices = @transform_9, window_bounds = array<i64: 1, 1>}, {transform_indices = @transform_10, window_bounds = array<i64: 8, 8>}, {transform_indices = @transform_11, window_bounds = array<i64: 8, 8>}, {transform_indices = @transform_12, window_bounds = array<i64: 8, 1>}]} {
    %c0 = arith.constant 0 : index
    %c0_0 = arith.constant 0 : index
    %0 = vector.load %arg1[%c0, %c0_0] : memref<8x16xf32, #tpu.memory_space<vmem>>, vector<8x16xf32>
    %c0_1 = arith.constant 0 : index
    %c0_2 = arith.constant 0 : index
    %1 = vector.load %arg2[%c0_1, %c0_2] : memref<8x8xf32, #tpu.memory_space<vmem>>, vector<8x8xf32>
    %c0_3 = arith.constant 0 : index
    %c0_4 = arith.constant 0 : index
    %2 = vector.load %arg3[%c0_3, %c0_4] : memref<16x32xf32, #tpu.memory_space<vmem>>, vector<16x32xf32>
    %cst = arith.constant dense<0.000000e+00> : vector<8x32xf32>
    %3 = tpu.matmul %0, %2, %cst {dimension_numbers = #tpu.dot_dimension_numbers<[1], [0], [0], [1], [0, 0, 1, 1], [], []>} : vector<8x16xf32>, vector<16x32xf32>, vector<8x32xf32> -> vector<8x32xf32>
    %c0_5 = arith.constant 0 : index
    %c0_6 = arith.constant 0 : index
    %4 = vector.load %arg4[%c0_5, %c0_6] : memref<1x32xf32, #tpu.memory_space<vmem>>, vector<1x32xf32>
    %5 = vector.broadcast %4 : vector<1x32xf32> to vector<8x32xf32>
    %6 = arith.addf %3, %5 : vector<8x32xf32>
    %7 = math.tanh %6 : vector<8x32xf32>
    %c0_7 = arith.constant 0 : index
    %c0_8 = arith.constant 0 : index
    %8 = vector.load %arg5[%c0_7, %c0_8] : memref<32x16xf32, #tpu.memory_space<vmem>>, vector<32x16xf32>
    %cst_9 = arith.constant dense<0.000000e+00> : vector<8x16xf32>
    %9 = tpu.matmul %7, %8, %cst_9 {dimension_numbers = #tpu.dot_dimension_numbers<[1], [0], [0], [1], [0, 0, 1, 1], [], []>} : vector<8x32xf32>, vector<32x16xf32>, vector<8x16xf32> -> vector<8x16xf32>
    %c0_10 = arith.constant 0 : index
    %c0_11 = arith.constant 0 : index
    %10 = vector.load %arg6[%c0_10, %c0_11] : memref<1x16xf32, #tpu.memory_space<vmem>>, vector<1x16xf32>
    %11 = vector.broadcast %10 : vector<1x16xf32> to vector<8x16xf32>
    %12 = arith.addf %9, %11 : vector<8x16xf32>
    %13 = vector.extract_strided_slice %12 {offsets = [0, 0], sizes = [8, 8], strides = [1, 1]} : vector<8x16xf32> to vector<8x8xf32>
    %14 = vector.extract_strided_slice %12 {offsets = [0, 8], sizes = [8, 8], strides = [1, 1]} : vector<8x16xf32> to vector<8x8xf32>
    %cst_12 = arith.constant 5.000000e-01 : f32
    %15 = vector.broadcast %cst_12 : f32 to vector<8x8xf32>
    %16 = arith.mulf %14, %15 : vector<8x8xf32>
    %17 = math.exp %16 : vector<8x8xf32>
    %18 = arith.mulf %17, %1 : vector<8x8xf32>
    %19 = arith.addf %13, %18 : vector<8x8xf32>
    %c0_13 = arith.constant 0 : index
    %c0_14 = arith.constant 0 : index
    %20 = vector.load %arg7[%c0_13, %c0_14] : memref<8x32xf32, #tpu.memory_space<vmem>>, vector<8x32xf32>
    %cst_15 = arith.constant dense<0.000000e+00> : vector<8x32xf32>
    %21 = tpu.matmul %19, %20, %cst_15 {dimension_numbers = #tpu.dot_dimension_numbers<[1], [0], [0], [1], [0, 0, 1, 1], [], []>} : vector<8x8xf32>, vector<8x32xf32>, vector<8x32xf32> -> vector<8x32xf32>
    %c0_16 = arith.constant 0 : index
    %c0_17 = arith.constant 0 : index
    %22 = vector.load %arg8[%c0_16, %c0_17] : memref<1x32xf32, #tpu.memory_space<vmem>>, vector<1x32xf32>
    %23 = vector.broadcast %22 : vector<1x32xf32> to vector<8x32xf32>
    %24 = arith.addf %21, %23 : vector<8x32xf32>
    %25 = math.tanh %24 : vector<8x32xf32>
    %c0_18 = arith.constant 0 : index
    %c0_19 = arith.constant 0 : index
    %26 = vector.load %arg9[%c0_18, %c0_19] : memref<1x32xf32, #tpu.memory_space<vmem>>, vector<1x32xf32>
    %27 = vector.broadcast %26 : vector<1x32xf32> to vector<8x32xf32>
    %28 = arith.mulf %25, %27 : vector<8x32xf32>
    %cst_20 = arith.constant dense<0.000000e+00> : vector<8xf32>
    %29 = vector.multi_reduction <add>, %28, %cst_20 [1] : vector<8x32xf32> to vector<8xf32>
    %30 = vector.shape_cast %29 : vector<8xf32> to vector<8x1xf32>
    %c0_21 = arith.constant 0 : index
    %c0_22 = arith.constant 0 : index
    %31 = vector.load %arg10[%c0_21, %c0_22] : memref<1x1xf32, #tpu.memory_space<vmem>>, vector<1x1xf32>
    %32 = vector.broadcast %31 : vector<1x1xf32> to vector<8x1xf32>
    %33 = arith.addf %30, %32 : vector<8x1xf32>
    %cst_23 = arith.constant 5.000000e-01 : f32
    %34 = vector.broadcast %cst_23 : f32 to vector<8x1xf32>
    %35 = arith.mulf %34, %33 : vector<8x1xf32>
    %36 = math.tanh %35 : vector<8x1xf32>
    %cst_24 = arith.constant 1.000000e+00 : f32
    %37 = vector.broadcast %cst_24 : f32 to vector<8x1xf32>
    %38 = arith.addf %36, %37 : vector<8x1xf32>
    %cst_25 = arith.constant 5.000000e-01 : f32
    %39 = vector.broadcast %cst_25 : f32 to vector<8x1xf32>
    %40 = arith.mulf %39, %38 : vector<8x1xf32>
    %c0_26 = arith.constant 0 : index
    %c0_27 = arith.constant 0 : index
    %41 = vector.load %arg11[%c0_26, %c0_27] : memref<8x8xf32, #tpu.memory_space<vmem>>, vector<8x8xf32>
    tpu.vector_store %arg11[%c0_26, %c0_27], %13 {strides = array<i32>} : memref<8x8xf32, #tpu.memory_space<vmem>>, vector<8x8xf32>,
    %c0_28 = arith.constant 0 : index
    %c0_29 = arith.constant 0 : index
    %42 = vector.load %arg12[%c0_28, %c0_29] : memref<8x8xf32, #tpu.memory_space<vmem>>, vector<8x8xf32>
    tpu.vector_store %arg12[%c0_28, %c0_29], %14 {strides = array<i32>} : memref<8x8xf32, #tpu.memory_space<vmem>>, vector<8x8xf32>,
    %c0_30 = arith.constant 0 : index
    %c0_31 = arith.constant 0 : index
    %43 = vector.load %arg13[%c0_30, %c0_31] : memref<8x1xf32, #tpu.memory_space<vmem>>, vector<8x1xf32>
    tpu.vector_store %arg13[%c0_30, %c0_31], %40 {strides = array<i32>} : memref<8x1xf32, #tpu.memory_space<vmem>>, vector<8x1xf32>,
    return
  }
  func.func @transform_0(%arg0: i32) -> (i32, i32) {
    %c0_i32 = arith.constant 0 : i32
    %c0_i32_0 = arith.constant 0 : i32
    return %arg0, %c0_i32 : i32, i32
  }
  func.func @transform_1(%arg0: i32) -> (i32, i32) {
    %c0_i32 = arith.constant 0 : i32
    %c0_i32_0 = arith.constant 0 : i32
    return %arg0, %c0_i32 : i32, i32
  }
  func.func @transform_2(%arg0: i32) -> (i32, i32) {
    %c0_i32 = arith.constant 0 : i32
    %c0_i32_0 = arith.constant 0 : i32
    %c0_i32_1 = arith.constant 0 : i32
    return %c0_i32, %c0_i32_0 : i32, i32
  }
  func.func @transform_3(%arg0: i32) -> (i32, i32) {
    %c0_i32 = arith.constant 0 : i32
    %c0_i32_0 = arith.constant 0 : i32
    %c0_i32_1 = arith.constant 0 : i32
    return %c0_i32, %c0_i32_0 : i32, i32
  }
  func.func @transform_4(%arg0: i32) -> (i32, i32) {
    %c0_i32 = arith.constant 0 : i32
    %c0_i32_0 = arith.constant 0 : i32
    %c0_i32_1 = arith.constant 0 : i32
    return %c0_i32, %c0_i32_0 : i32, i32
  }
  func.func @transform_5(%arg0: i32) -> (i32, i32) {
    %c0_i32 = arith.constant 0 : i32
    %c0_i32_0 = arith.constant 0 : i32
    %c0_i32_1 = arith.constant 0 : i32
    return %c0_i32, %c0_i32_0 : i32, i32
  }
  func.func @transform_6(%arg0: i32) -> (i32, i32) {
    %c0_i32 = arith.constant 0 : i32
    %c0_i32_0 = arith.constant 0 : i32
    %c0_i32_1 = arith.constant 0 : i32
    return %c0_i32, %c0_i32_0 : i32, i32
  }
  func.func @transform_7(%arg0: i32) -> (i32, i32) {
    %c0_i32 = arith.constant 0 : i32
    %c0_i32_0 = arith.constant 0 : i32
    %c0_i32_1 = arith.constant 0 : i32
    return %c0_i32, %c0_i32_0 : i32, i32
  }
  func.func @transform_8(%arg0: i32) -> (i32, i32) {
    %c0_i32 = arith.constant 0 : i32
    %c0_i32_0 = arith.constant 0 : i32
    %c0_i32_1 = arith.constant 0 : i32
    return %c0_i32, %c0_i32_0 : i32, i32
  }
  func.func @transform_9(%arg0: i32) -> (i32, i32) {
    %c0_i32 = arith.constant 0 : i32
    %c0_i32_0 = arith.constant 0 : i32
    %c0_i32_1 = arith.constant 0 : i32
    return %c0_i32, %c0_i32_0 : i32, i32
  }
  func.func @transform_10(%arg0: i32) -> (i32, i32) {
    %c0_i32 = arith.constant 0 : i32
    %c0_i32_0 = arith.constant 0 : i32
    return %arg0, %c0_i32 : i32, i32
  }
  func.func @transform_11(%arg0: i32) -> (i32, i32) {
    %c0_i32 = arith.constant 0 : i32
    %c0_i32_0 = arith.constant 0 : i32
    return %arg0, %c0_i32 : i32, i32
  }
  func.func @transform_12(%arg0: i32) -> (i32, i32) {
    %c0_i32 = arith.constant 0 : i32
    %c0_i32_0 = arith.constant 0 : i32
    return %arg0, %c0_i32 : i32, i32
  }
}

module attributes {stable_mosaic.version = 11 : i64} {
  func.func @_vdb_kernel(%arg0: i32, %arg1: memref<8x16xf32, #tpu.memory_space<vmem>>, %arg2: memref<8x8xf32, #tpu.memory_space<vmem>>, %arg3: memref<16x32xf32, #tpu.memory_space<vmem>>, %arg4: memref<1x32xf32, #tpu.memory_space<vmem>>, %arg5: memref<32x16xf32, #tpu.memory_space<vmem>>, %arg6: memref<1x16xf32, #tpu.memory_space<vmem>>, %arg7: memref<8x32xf32, #tpu.memory_space<vmem>>, %arg8: memref<1x32xf32, #tpu.memory_space<vmem>>, %arg9: memref<1x32xf32, #tpu.memory_space<vmem>>, %arg10: memref<1x1xf32, #tpu.memory_space<vmem>>, %arg11: memref<8x8xf32, #tpu.memory_space<vmem>>, %arg12: memref<8x8xf32, #tpu.memory_space<vmem>>, %arg13: memref<8x1xf32, #tpu.memory_space<vmem>>) attributes {dimension_semantics = [#tpu.dimension_semantics<parallel>], iteration_bounds = array<i64: 1>, scalar_prefetch = 0 : i64, scratch_operands = 0 : i64, tpu.core_type = #tpu.core_type<tc>, window_params = [{transform_indices = @transform_0, window_bounds = array<i64: 8, 16>}, {transform_indices = @transform_1, window_bounds = array<i64: 8, 8>}, {pipeline_mode = #tpu.pipeline_mode<synchronous>, transform_indices = @transform_2, window_bounds = array<i64: 16, 32>}, {pipeline_mode = #tpu.pipeline_mode<synchronous>, transform_indices = @transform_3, window_bounds = array<i64: 1, 32>}, {pipeline_mode = #tpu.pipeline_mode<synchronous>, transform_indices = @transform_4, window_bounds = array<i64: 32, 16>}, {pipeline_mode = #tpu.pipeline_mode<synchronous>, transform_indices = @transform_5, window_bounds = array<i64: 1, 16>}, {pipeline_mode = #tpu.pipeline_mode<synchronous>, transform_indices = @transform_6, window_bounds = array<i64: 8, 32>}, {pipeline_mode = #tpu.pipeline_mode<synchronous>, transform_indices = @transform_7, window_bounds = array<i64: 1, 32>}, {pipeline_mode = #tpu.pipeline_mode<synchronous>, transform_indices = @transform_8, window_bounds = array<i64: 1, 32>}, {pipeline_mode = #tpu.pipeline_mode<synchronous>, transform_indices = @transform_9, window_bounds = array<i64: 1, 1>}, {transform_indices = @transform_10, window_bounds = array<i64: 8, 8>}, {transform_indices = @transform_11, window_bounds = array<i64: 8, 8>}, {transform_indices = @transform_12, window_bounds = array<i64: 8, 1>}]} {
    %c0 = arith.constant 0 : index
    %c0_0 = arith.constant 0 : index
    %0 = vector.load %arg1[%c0, %c0_0] : memref<8x16xf32, #tpu.memory_space<vmem>>, vector<8x16xf32>
    %c0_1 = arith.constant 0 : index
    %c0_2 = arith.constant 0 : index
    %1 = vector.load %arg2[%c0_1, %c0_2] : memref<8x8xf32, #tpu.memory_space<vmem>>, vector<8x8xf32>
    %c0_3 = arith.constant 0 : index
    %c0_4 = arith.constant 0 : index
    %2 = vector.load %arg3[%c0_3, %c0_4] : memref<16x32xf32, #tpu.memory_space<vmem>>, vector<16x32xf32>
    %cst = arith.constant dense<0.000000e+00> : vector<8x32xf32>
    %3 = tpu.matmul %0, %2, %cst {dimension_numbers = #tpu.dot_dimension_numbers<[1], [0], [0], [1], [0, 0, 1, 1], [], []>} : vector<8x16xf32>, vector<16x32xf32>, vector<8x32xf32> -> vector<8x32xf32>
    %c0_5 = arith.constant 0 : index
    %c0_6 = arith.constant 0 : index
    %4 = vector.load %arg4[%c0_5, %c0_6] : memref<1x32xf32, #tpu.memory_space<vmem>>, vector<1x32xf32>
    %5 = vector.broadcast %4 : vector<1x32xf32> to vector<8x32xf32>
    %6 = arith.addf %3, %5 : vector<8x32xf32>
    %7 = math.tanh %6 : vector<8x32xf32>
    %c0_7 = arith.constant 0 : index
    %c0_8 = arith.constant 0 : index
    %8 = vector.load %arg5[%c0_7, %c0_8] : memref<32x16xf32, #tpu.memory_space<vmem>>, vector<32x16xf32>
    %cst_9 = arith.constant dense<0.000000e+00> : vector<8x16xf32>
    %9 = tpu.matmul %7, %8, %cst_9 {dimension_numbers = #tpu.dot_dimension_numbers<[1], [0], [0], [1], [0, 0, 1, 1], [], []>} : vector<8x32xf32>, vector<32x16xf32>, vector<8x16xf32> -> vector<8x16xf32>
    %c0_10 = arith.constant 0 : index
    %c0_11 = arith.constant 0 : index
    %10 = vector.load %arg6[%c0_10, %c0_11] : memref<1x16xf32, #tpu.memory_space<vmem>>, vector<1x16xf32>
    %11 = vector.broadcast %10 : vector<1x16xf32> to vector<8x16xf32>
    %12 = arith.addf %9, %11 : vector<8x16xf32>
    %13 = vector.extract_strided_slice %12 {offsets = [0, 0], sizes = [8, 8], strides = [1, 1]} : vector<8x16xf32> to vector<8x8xf32>
    %14 = vector.extract_strided_slice %12 {offsets = [0, 8], sizes = [8, 8], strides = [1, 1]} : vector<8x16xf32> to vector<8x8xf32>
    %cst_12 = arith.constant 5.000000e-01 : f32
    %15 = vector.broadcast %cst_12 : f32 to vector<8x8xf32>
    %16 = arith.mulf %14, %15 : vector<8x8xf32>
    %17 = math.exp %16 : vector<8x8xf32>
    %18 = arith.mulf %17, %1 : vector<8x8xf32>
    %19 = arith.addf %13, %18 : vector<8x8xf32>
    %c0_13 = arith.constant 0 : index
    %c0_14 = arith.constant 0 : index
    %20 = vector.load %arg7[%c0_13, %c0_14] : memref<8x32xf32, #tpu.memory_space<vmem>>, vector<8x32xf32>
    %cst_15 = arith.constant dense<0.000000e+00> : vector<8x32xf32>
    %21 = tpu.matmul %19, %20, %cst_15 {dimension_numbers = #tpu.dot_dimension_numbers<[1], [0], [0], [1], [0, 0, 1, 1], [], []>} : vector<8x8xf32>, vector<8x32xf32>, vector<8x32xf32> -> vector<8x32xf32>
    %c0_16 = arith.constant 0 : index
    %c0_17 = arith.constant 0 : index
    %22 = vector.load %arg8[%c0_16, %c0_17] : memref<1x32xf32, #tpu.memory_space<vmem>>, vector<1x32xf32>
    %23 = vector.broadcast %22 : vector<1x32xf32> to vector<8x32xf32>
    %24 = arith.addf %21, %23 : vector<8x32xf32>
    %25 = math.tanh %24 : vector<8x32xf32>
    %c0_18 = arith.constant 0 : index
    %c0_19 = arith.constant 0 : index
    %26 = vector.load %arg9[%c0_18, %c0_19] : memref<1x32xf32, #tpu.memory_space<vmem>>, vector<1x32xf32>
    %27 = vector.broadcast %26 : vector<1x32xf32> to vector<8x32xf32>
    %28 = arith.mulf %25, %27 : vector<8x32xf32>
    %cst_20 = arith.constant dense<0.000000e+00> : vector<8xf32>
    %29 = vector.multi_reduction <add>, %28, %cst_20 [1] : vector<8x32xf32> to vector<8xf32>
    %30 = vector.shape_cast %29 : vector<8xf32> to vector<8x1xf32>
    %c0_21 = arith.constant 0 : index
    %c0_22 = arith.constant 0 : index
    %31 = vector.load %arg10[%c0_21, %c0_22] : memref<1x1xf32, #tpu.memory_space<vmem>>, vector<1x1xf32>
    %32 = vector.broadcast %31 : vector<1x1xf32> to vector<8x1xf32>
    %33 = arith.addf %30, %32 : vector<8x1xf32>
    %cst_23 = arith.constant 5.000000e-01 : f32
    %34 = vector.broadcast %cst_23 : f32 to vector<8x1xf32>
    %35 = arith.mulf %34, %33 : vector<8x1xf32>
    %36 = math.tanh %35 : vector<8x1xf32>
    %cst_24 = arith.constant 1.000000e+00 : f32
    %37 = vector.broadcast %cst_24 : f32 to vector<8x1xf32>
    %38 = arith.addf %36, %37 : vector<8x1xf32>
    %cst_25 = arith.constant 5.000000e-01 : f32
    %39 = vector.broadcast %cst_25 : f32 to vector<8x1xf32>
    %40 = arith.mulf %39, %38 : vector<8x1xf32>
    %c0_26 = arith.constant 0 : index
    %c0_27 = arith.constant 0 : index
    %41 = vector.load %arg11[%c0_26, %c0_27] : memref<8x8xf32, #tpu.memory_space<vmem>>, vector<8x8xf32>
    tpu.vector_store %arg11[%c0_26, %c0_27], %13 {strides = array<i32>} : memref<8x8xf32, #tpu.memory_space<vmem>>, vector<8x8xf32>,
    %c0_28 = arith.constant 0 : index
    %c0_29 = arith.constant 0 : index
    %42 = vector.load %arg12[%c0_28, %c0_29] : memref<8x8xf32, #tpu.memory_space<vmem>>, vector<8x8xf32>
    tpu.vector_store %arg12[%c0_28, %c0_29], %14 {strides = array<i32>} : memref<8x8xf32, #tpu.memory_space<vmem>>, vector<8x8xf32>,
    %c0_30 = arith.constant 0 : index
    %c0_31 = arith.constant 0 : index
    %43 = vector.load %arg13[%c0_30, %c0_31] : memref<8x1xf32, #tpu.memory_space<vmem>>, vector<8x1xf32>
    tpu.vector_store %arg13[%c0_30, %c0_31], %40 {strides = array<i32>} : memref<8x1xf32, #tpu.memory_space<vmem>>, vector<8x1xf32>,
    return
  }
  func.func @transform_0(%arg0: i32) -> (i32, i32) {
    %c0_i32 = arith.constant 0 : i32
    %c0_i32_0 = arith.constant 0 : i32
    return %arg0, %c0_i32 : i32, i32
  }
  func.func @transform_1(%arg0: i32) -> (i32, i32) {
    %c0_i32 = arith.constant 0 : i32
    %c0_i32_0 = arith.constant 0 : i32
    return %arg0, %c0_i32 : i32, i32
  }
  func.func @transform_2(%arg0: i32) -> (i32, i32) {
    %c0_i32 = arith.constant 0 : i32
    %c0_i32_0 = arith.constant 0 : i32
    %c0_i32_1 = arith.constant 0 : i32
    return %c0_i32, %c0_i32_0 : i32, i32
  }
  func.func @transform_3(%arg0: i32) -> (i32, i32) {
    %c0_i32 = arith.constant 0 : i32
    %c0_i32_0 = arith.constant 0 : i32
    %c0_i32_1 = arith.constant 0 : i32
    return %c0_i32, %c0_i32_0 : i32, i32
  }
  func.func @transform_4(%arg0: i32) -> (i32, i32) {
    %c0_i32 = arith.constant 0 : i32
    %c0_i32_0 = arith.constant 0 : i32
    %c0_i32_1 = arith.constant 0 : i32
    return %c0_i32, %c0_i32_0 : i32, i32
  }
  func.func @transform_5(%arg0: i32) -> (i32, i32) {
    %c0_i32 = arith.constant 0 : i32
    %c0_i32_0 = arith.constant 0 : i32
    %c0_i32_1 = arith.constant 0 : i32
    return %c0_i32, %c0_i32_0 : i32, i32
  }
  func.func @transform_6(%arg0: i32) -> (i32, i32) {
    %c0_i32 = arith.constant 0 : i32
    %c0_i32_0 = arith.constant 0 : i32
    %c0_i32_1 = arith.constant 0 : i32
    return %c0_i32, %c0_i32_0 : i32, i32
  }
  func.func @transform_7(%arg0: i32) -> (i32, i32) {
    %c0_i32 = arith.constant 0 : i32
    %c0_i32_0 = arith.constant 0 : i32
    %c0_i32_1 = arith.constant 0 : i32
    return %c0_i32, %c0_i32_0 : i32, i32
  }
  func.func @transform_8(%arg0: i32) -> (i32, i32) {
    %c0_i32 = arith.constant 0 : i32
    %c0_i32_0 = arith.constant 0 : i32
    %c0_i32_1 = arith.constant 0 : i32
    return %c0_i32, %c0_i32_0 : i32, i32
  }
  func.func @transform_9(%arg0: i32) -> (i32, i32) {
    %c0_i32 = arith.constant 0 : i32
    %c0_i32_0 = arith.constant 0 : i32
    %c0_i32_1 = arith.constant 0 : i32
    return %c0_i32, %c0_i32_0 : i32, i32
  }
  func.func @transform_10(%arg0: i32) -> (i32, i32) {
    %c0_i32 = arith.constant 0 : i32
    %c0_i32_0 = arith.constant 0 : i32
    return %arg0, %c0_i32 : i32, i32
  }
  func.func @transform_11(%arg0: i32) -> (i32, i32) {
    %c0_i32 = arith.constant 0 : i32
    %c0_i32_0 = arith.constant 0 : i32
    return %arg0, %c0_i32 : i32, i32
  }
  func.func @transform_12(%arg0: i32) -> (i32, i32) {
    %c0_i32 = arith.constant 0 : i32
    %c0_i32_0 = arith.constant 0 : i32
    return %arg0, %c0_i32 : i32, i32
  }
}

</mosaic_0001>

<bundles_post_ra>
// kernel: tpu_custom_call.1
= control target key start
LH: loop header
LB: loop body
LE: loop exit
PB: predicated region body
PF: predicated region fallthrough
CT: control target
= control target key end

     0   :  { %s631_s0 = inlined_call_operand.vmem [shape: f32[8,16], index: 0, kind: input, shape index: {}]   ;;  %s632_s1 = inlined_call_operand.vmem [shape: f32[8,8], index: 1, kind: input, shape index: {}]   ;;  %s633_s2 = inlined_call_operand.vmem [shape: f32[16,32], index: 2, kind: input, shape index: {}]   ;;  %s634_s3 = inlined_call_operand.vmem [shape: f32[1,32], index: 3, kind: input, shape index: {}]   ;;  %s635_s4 = inlined_call_operand.vmem [shape: f32[32,16], index: 4, kind: input, shape index: {}]   ;;  %s636_s5 = inlined_call_operand.vmem [shape: f32[1,16], index: 5, kind: input, shape index: {}]   ;;  %s637_s6 = inlined_call_operand.vmem [shape: f32[8,32], index: 6, kind: input, shape index: {}]   ;;  %s638_s7 = inlined_call_operand.vmem [shape: f32[1,32], index: 7, kind: input, shape index: {}]   ;;  %s639_s8 = inlined_call_operand.vmem [shape: f32[1,32], index: 8, kind: input, shape index: {}]   ;;  %s640_s9 = inlined_call_operand.<no memory space> [shape: f32[1,1], index: 9, kind: input, shape index: {}]   ;;  %s641_s10 = inlined_call_operand.hbm [shape: f32[8,8], index: 10, kind: output, shape index: {0}]   ;;  %s642_s11 = inlined_call_operand.hbm [shape: f32[8,8], index: 11, kind: output, shape index: {1}]   ;;  %s643_s12 = inlined_call_operand.vmem [shape: f32[8,1], index: 12, kind: output, shape index: {2}]  }
   0x1   :  { %v18_v0 = vstv %s640_s9 }
   0x2   :  { %19 = vst [vmem:[#allocation2] sm:$0x1] %v18_v0 }
   0x3   :  { %20 = vsyncpa [#allocation4], 0  ;;  %v44_v1 = vld [vmem:[%s633_s2] sm:$0xff]  ;;  %v45_v2 = vld [vmem:[%s633_s2 + $0x8] sm:$0xff]  ;;  %v485_v3 = vmov 0.0|0.0   ;;  %vm486_vm0 = vmmov 0  }
   0x4   :  { %413 = vmatprep.subr.bf16.mxu0 %v485_v3  ;;  %v414_v4 = vpack.c.bf16 %v45_v2, %v44_v1  ;;  %v487_v5 = vmov 0.0  }
   0x5   :  { %394 = vmatprep.mubr.msk.f32.mxu0 %vm486_vm0, %v487_v5 }
   0x6   :  { %21 = vsyncpa [#allocation6], 0  ;;  %416 = vmatprep.subr.bf16.mxu1 %v485_v3  ;;  %405 = vmatprep.mubr.msk.f32.mxu1 %vm486_vm0, %v487_v5  ;;  %v42_v6 = vld [vmem:[%s631_s0] sm:$0xff]  ;;  %vm53_vm1 = vcmask 130048   ;;  %v129_v8 = vld [vmem:[%s635_s4 + $0x8] sm:$0xff]  ;;  %s488_s18 = smov 8  }
   0x7   :  { %415 = vmatpush3.bf16.msra.mxu0 %v414_v4  ;;  %v128_v7 = vld [vmem:[%s635_s4] sm:$0xff]  ;;  %v130_v9 = vld [vmem:[%s635_s4 + $0x10] sm:$0xff]  ;;  %v131_v11 = vld [vmem:[%s635_s4 + $0x18] sm:$0xff]  ;;  %vm139_vm2 = vcmask 261120   ;;  %vm234_vm3 = vcmask 64512   ;;  %s490_s25 = smov [#allocation3]  }
   0x8   :  { %408 = vmatprep.subr.mxu0 %v487_v5  ;;  %v417_v10 = vpack.c.bf16 %v129_v8, %v128_v7  ;;  %v420_v12 = vpack.c.bf16 %v131_v11, %v130_v9  ;;  %v43_v13 = vld [vmem:[%s632_s1] sm:$0xff]  ;;  %s346_s26 = sshll.u32 %s490_s25, 4  ;;  %s347_s26 = int_to_ptr.vmem [resolvable:$true] %s346_s26 }
   0x9   :  { %217 = vrot.lane.b32.xlu0 %v43_v13, %s488_s18  ;;  %v372_v14 = vld [vmem:[%s634_s3] ss:$0 sm:$0xff]  ;;  %s489_s3 = smov 120   ;;  %s437_s9 = scalar_lea.vmem %s347_s26, 128 }
   0xa   :  { %395 = vmatmul.mubr.msk.f32.vlgmr.msra.gmra.mrb[0].mxu0 %vm53_vm1, %v42_v6  ;;  %418 = vmatpush3.bf16.msra.mxu1 %v417_v10  ;;  %v226_v19 = vld [vmem:[%s637_s6] sm:$0xff]  ;;  %p438_p0 = scmp.ne.s32.totalorder %s347_s26, %s437_s9  ;;  %p442_p1 = scmp.lt.s32.totalorder %s347_s26, %s347_s26 }
   0xb   :  { %410 = vmatprep.mubr.msk.f32.mxu0 %vm486_vm0, %v487_v5  ;;  %419 = vmatprep.subr.bf16.mxu1 %v485_v3  ;;  %v374_v20 = vld [vmem:[%s636_s5] ss:$0 sm:$0xff]  ;;  %p443_p2 = scmp.lt.s32.totalorder %s437_s9, %s437_s9 }
   0xc   :  { %409 = vmatpush3.msra.mxu0 %v226_v19  ;;  %v376_v31 = vld [vmem:[%s638_s7] ss:$0 sm:$0xff] }
   0xd   :  { %v378_v35 = vld [vmem:[%s639_s8] ss:$0 sm:$0xff]  ;;  %p444_p3 = por %p443_p2, %p442_p1 }
   0xe   :  { %421 = vmatpush3.bf16.msra.mxu1 %v420_v12 }
   0xf   :  { %p445_p4 = pnand %p444_p3, %p438_p0 }
  0x7b   :  { %v218_v26 = vpop.permute.xlu0 %217 }
  0xdd   :  { %v123_v15 = vpop.f32.mrb[0].mxu0 }
  0xde   :  { %v124_v16 = vadd.f32 %v372_v14, %v123_v15  ;;  %v396_v17 = vpop.f32.mrb[1].mxu0 }
  0xe0   :  { %429 = vtanh.f32 %v124_v16 }
  0xea   :  { %v430_v18 = vpop.eup %429 }
  0xeb   :  { %406 = vmatmul.mubr.msk.f32.vlgmr.msra.gmra.mrb[0].mxu1 %vm139_vm2, %v430_v18 }
 0x1be   :  { %v209_v21 = vpop.f32.mrb[0].mxu1 }
 0x1bf   :  { %v210_v22 = vadd.f32 %v374_v20, %v209_v21  ;;  %v407_v23 = vpop.f32.mrb[1].mxu1 }
 0x1c1   :  { %v213_v24 = vmul.f32 0.5, %v210_v22  ;;  %332 = vst.msk [vmem:[#allocation3] sm:$0xff] %vm234_vm3, %v210_v22 }
 0x1c3   :  { %v214_v25 = vmul.f32 1.442695, %v213_v24 }
 0x1c5   :  { %431 = vpow2.f32 %v214_v25 }
 0x1cf   :  { %v432_v27 = vpop.eup %431 }
 0x1d0   :  { %v220_v28 = vmul.f32 %v432_v27, %v218_v26 }
 0x1d2   :  { %222 = vrot.lane.b32.xlu0 %v220_v28, %s489_s3 }
 0x244   :  { %v223_v29 = vpop.permute.xlu0 %222 }
 0x245   :  { %v225_v30 = vadd.f32 %v223_v29, %v210_v22 }
 0x247   :  { %411 = vmatmul.mubr.msk.f32.vlgmr.msra.gmra.mrb[2].mxu0 %vm234_vm3, %v225_v30 }
 0x31a   :  { %v304_v32 = vpop.f32.mrb[2].mxu0 }
 0x31b   :  { %v305_v33 = vadd.f32 %v376_v31, %v304_v32  ;;  %v412_v34 = vpop.f32.mrb[3].mxu0 }
 0x31d   :  { %433 = vtanh.f32 %v305_v33 }
 0x327   :  { %v434_v36 = vpop.eup %433 }
 0x328   :  { %v316_v37 = vmul.f32 %v434_v36, %v378_v35 }
 0x32a   :  { %v317_v38 = vsel %vm139_vm2, %v316_v37, 0.0 }
 0x32b   :  { %318 = vadd.xlane.f32.xlu1 %v317_v38 }
 0x33c   :  { %334 = vrot.lane.b32.xlu1 %v210_v22, %s489_s3 }
 0x33d   :  { %448 = shalt.err (!%p445_p4)
}
 0x33e   :  { %s449_s8 = scalar_lea.hbm %s641_s10, 128 }
 0x33f   :  { %p450_p5 = scmp.ne.s32.totalorder %s641_s10, %s449_s8  ;;  %p453_p6 = scmp.lt.u32.totalorder %s449_s8, %s641_s10 }
 0x341   :  { %p455_p7 = pnand %p453_p6, %p450_p5 }
 0x343   :  { %458 = shalt.err (!%p455_p7)
}
 0x344   :  { %349 = dma.vmem_to_hbm [thread:$0]  %s347_s26, 128, %s641_s10, [#allocation4]   ;;  %v379_v39 = vld [vmem:[#allocation2] ss:$0 sm:$0xff] }
 0x345   :  { %s491_s15 = smov [#allocation5]  }
 0x346   :  { %s356_s16 = sshll.u32 %s491_s15, 4  ;;  %s357_s16 = int_to_ptr.vmem [resolvable:$true] %s356_s16 }
 0x347   :  { %s459_s0 = scalar_lea.vmem %s357_s16, 128  ;;  %p464_p9 = scmp.lt.s32.totalorder %s357_s16, %s357_s16 }
 0x348   :  { %p460_p8 = scmp.ne.s32.totalorder %s357_s16, %s459_s0  ;;  %p465_p10 = scmp.lt.s32.totalorder %s459_s0, %s459_s0 }
 0x34a   :  { %p466_p11 = por %p465_p10, %p464_p9 }
 0x34c   :  { %p467_p12 = pnand %p466_p11, %p460_p8 }
 0x3b8   :  { %v319_v40 = vpop.xlane.xlu1 %318 }
 0x3b9   :  { %v327_v41 = vadd.f32 %v379_v39, %v319_v40 }
 0x3bb   :  { %v328_v42 = vmul.f32 0.5, %v327_v41 }
 0x3bc   :  { %v335_v43 = vpop.permute.xlu1 %334 }
 0x3bd   :  { %435 = vtanh.f32 %v328_v42  ;;  %337 = vst.msk [vmem:[#allocation5] sm:$0xff] %vm234_vm3, %v335_v43 }
 0x3be   :  { %470 = shalt.err (!%p467_p12)
}
 0x3bf   :  { %s471_s18 = scalar_lea.hbm %s642_s11, 128 }
 0x3c0   :  { %p472_p13 = scmp.ne.s32.totalorder %s642_s11, %s471_s18  ;;  %p475_p0 = scmp.lt.u32.totalorder %s471_s18, %s642_s11 }
 0x3c2   :  { %p477_p1 = pnand %p475_p0, %p472_p13 }
 0x3c4   :  { %480 = shalt.err (!%p477_p1)
}
 0x3c5   :  { %359 = dma.vmem_to_hbm [thread:$0]  %s357_s16, 128, %s642_s11, [#allocation6]   ;;  %vm338_vm4 = vcmask 7168  }
 0x3c7   :  { %v436_v44 = vpop.eup %435 }
 0x3c8   :  { %v330_v45 = vadd.f32 1.0, %v436_v44 }
 0x3ca   :  { %v331_v46 = vmul.f32 0.5, %v330_v45 }
 0x3cc   :  { %339 = vst.msk [vmem:[%s643_s12] sm:$0xff] %vm338_vm4, %v331_v46 }
 0x3cd   :  { %481 = dma.done.wait [#allocation4], 128  }
 0x3ce   :  { %482 = vsyncadd [#allocation4], 4294967168 }
 0x3cf   :  { %483 = dma.done.wait [#allocation6], 128  }
 0x3d0   :  { %484 = vsyncadd [#allocation6], 4294967168 }
 0x3d1   :  { %370 = vsyncpa [#allocation4], 1 }
 0x3d2   :  { %371 = vsyncpa [#allocation6], 1 }

// kernel: tpu_custom_call.1
= control target key start
LH: loop header
LB: loop body
LE: loop exit
PB: predicated region body
PF: predicated region fallthrough
CT: control target
= control target key end

     0   :  { %s631_s0 = inlined_call_operand.vmem [shape: f32[8,16], index: 0, kind: input, shape index: {}]   ;;  %s632_s1 = inlined_call_operand.vmem [shape: f32[8,8], index: 1, kind: input, shape index: {}]   ;;  %s633_s2 = inlined_call_operand.vmem [shape: f32[16,32], index: 2, kind: input, shape index: {}]   ;;  %s634_s3 = inlined_call_operand.vmem [shape: f32[1,32], index: 3, kind: input, shape index: {}]   ;;  %s635_s4 = inlined_call_operand.vmem [shape: f32[32,16], index: 4, kind: input, shape index: {}]   ;;  %s636_s5 = inlined_call_operand.vmem [shape: f32[1,16], index: 5, kind: input, shape index: {}]   ;;  %s637_s6 = inlined_call_operand.vmem [shape: f32[8,32], index: 6, kind: input, shape index: {}]   ;;  %s638_s7 = inlined_call_operand.vmem [shape: f32[1,32], index: 7, kind: input, shape index: {}]   ;;  %s639_s8 = inlined_call_operand.vmem [shape: f32[1,32], index: 8, kind: input, shape index: {}]   ;;  %s640_s9 = inlined_call_operand.<no memory space> [shape: f32[1,1], index: 9, kind: input, shape index: {}]   ;;  %s641_s10 = inlined_call_operand.hbm [shape: f32[8,8], index: 10, kind: output, shape index: {0}]   ;;  %s642_s11 = inlined_call_operand.hbm [shape: f32[8,8], index: 11, kind: output, shape index: {1}]   ;;  %s643_s12 = inlined_call_operand.vmem [shape: f32[8,1], index: 12, kind: output, shape index: {2}]  }
   0x1   :  { %v18_v0 = vstv %s640_s9 }
   0x2   :  { %19 = vst [vmem:[#allocation2] sm:$0x1] %v18_v0 }
   0x3   :  { %20 = vsyncpa [#allocation4], 0  ;;  %v44_v1 = vld [vmem:[%s633_s2] sm:$0xff]  ;;  %v45_v2 = vld [vmem:[%s633_s2 + $0x8] sm:$0xff]  ;;  %v485_v3 = vmov 0.0|0.0   ;;  %vm486_vm0 = vmmov 0  }
   0x4   :  { %413 = vmatprep.subr.bf16.mxu0 %v485_v3  ;;  %v414_v4 = vpack.c.bf16 %v45_v2, %v44_v1  ;;  %v487_v5 = vmov 0.0  }
   0x5   :  { %394 = vmatprep.mubr.msk.f32.mxu0 %vm486_vm0, %v487_v5 }
   0x6   :  { %21 = vsyncpa [#allocation6], 0  ;;  %416 = vmatprep.subr.bf16.mxu1 %v485_v3  ;;  %405 = vmatprep.mubr.msk.f32.mxu1 %vm486_vm0, %v487_v5  ;;  %v42_v6 = vld [vmem:[%s631_s0] sm:$0xff]  ;;  %vm53_vm1 = vcmask 130048   ;;  %v129_v8 = vld [vmem:[%s635_s4 + $0x8] sm:$0xff]  ;;  %s488_s18 = smov 8  }
   0x7   :  { %415 = vmatpush3.bf16.msra.mxu0 %v414_v4  ;;  %v128_v7 = vld [vmem:[%s635_s4] sm:$0xff]  ;;  %v130_v9 = vld [vmem:[%s635_s4 + $0x10] sm:$0xff]  ;;  %v131_v11 = vld [vmem:[%s635_s4 + $0x18] sm:$0xff]  ;;  %vm139_vm2 = vcmask 261120   ;;  %vm234_vm3 = vcmask 64512   ;;  %s490_s25 = smov [#allocation3]  }
   0x8   :  { %408 = vmatprep.subr.mxu0 %v487_v5  ;;  %v417_v10 = vpack.c.bf16 %v129_v8, %v128_v7  ;;  %v420_v12 = vpack.c.bf16 %v131_v11, %v130_v9  ;;  %v43_v13 = vld [vmem:[%s632_s1] sm:$0xff]  ;;  %s346_s26 = sshll.u32 %s490_s25, 4  ;;  %s347_s26 = int_to_ptr.vmem [resolvable:$true] %s346_s26 }
   0x9   :  { %217 = vrot.lane.b32.xlu0 %v43_v13, %s488_s18  ;;  %v372_v14 = vld [vmem:[%s634_s3] ss:$0 sm:$0xff]  ;;  %s489_s3 = smov 120   ;;  %s437_s9 = scalar_lea.vmem %s347_s26, 128 }
   0xa   :  { %395 = vmatmul.mubr.msk.f32.vlgmr.msra.gmra.mrb[0].mxu0 %vm53_vm1, %v42_v6  ;;  %418 = vmatpush3.bf16.msra.mxu1 %v417_v10  ;;  %v226_v19 = vld [vmem:[%s637_s6] sm:$0xff]  ;;  %p438_p0 = scmp.ne.s32.totalorder %s347_s26, %s437_s9  ;;  %p442_p1 = scmp.lt.s32.totalorder %s347_s26, %s347_s26 }
   0xb   :  { %410 = vmatprep.mubr.msk.f32.mxu0 %vm486_vm0, %v487_v5  ;;  %419 = vmatprep.subr.bf16.mxu1 %v485_v3  ;;  %v374_v20 = vld [vmem:[%s636_s5] ss:$0 sm:$0xff]  ;;  %p443_p2 = scmp.lt.s32.totalorder %s437_s9, %s437_s9 }
   0xc   :  { %409 = vmatpush3.msra.mxu0 %v226_v19  ;;  %v376_v31 = vld [vmem:[%s638_s7] ss:$0 sm:$0xff] }
   0xd   :  { %v378_v35 = vld [vmem:[%s639_s8] ss:$0 sm:$0xff]  ;;  %p444_p3 = por %p443_p2, %p442_p1 }
   0xe   :  { %421 = vmatpush3.bf16.msra.mxu1 %v420_v12 }
   0xf   :  { %p445_p4 = pnand %p444_p3, %p438_p0 }
  0x7b   :  { %v218_v26 = vpop.permute.xlu0 %217 }
  0xdd   :  { %v123_v15 = vpop.f32.mrb[0].mxu0 }
  0xde   :  { %v124_v16 = vadd.f32 %v372_v14, %v123_v15  ;;  %v396_v17 = vpop.f32.mrb[1].mxu0 }
  0xe0   :  { %429 = vtanh.f32 %v124_v16 }
  0xea   :  { %v430_v18 = vpop.eup %429 }
  0xeb   :  { %406 = vmatmul.mubr.msk.f32.vlgmr.msra.gmra.mrb[0].mxu1 %vm139_vm2, %v430_v18 }
 0x1be   :  { %v209_v21 = vpop.f32.mrb[0].mxu1 }
 0x1bf   :  { %v210_v22 = vadd.f32 %v374_v20, %v209_v21  ;;  %v407_v23 = vpop.f32.mrb[1].mxu1 }
 0x1c1   :  { %v213_v24 = vmul.f32 0.5, %v210_v22  ;;  %332 = vst.msk [vmem:[#allocation3] sm:$0xff] %vm234_vm3, %v210_v22 }
 0x1c3   :  { %v214_v25 = vmul.f32 1.442695, %v213_v24 }
 0x1c5   :  { %431 = vpow2.f32 %v214_v25 }
 0x1cf   :  { %v432_v27 = vpop.eup %431 }
 0x1d0   :  { %v220_v28 = vmul.f32 %v432_v27, %v218_v26 }
 0x1d2   :  { %222 = vrot.lane.b32.xlu0 %v220_v28, %s489_s3 }
 0x244   :  { %v223_v29 = vpop.permute.xlu0 %222 }
 0x245   :  { %v225_v30 = vadd.f32 %v223_v29, %v210_v22 }
 0x247   :  { %411 = vmatmul.mubr.msk.f32.vlgmr.msra.gmra.mrb[2].mxu0 %vm234_vm3, %v225_v30 }
 0x31a   :  { %v304_v32 = vpop.f32.mrb[2].mxu0 }
 0x31b   :  { %v305_v33 = vadd.f32 %v376_v31, %v304_v32  ;;  %v412_v34 = vpop.f32.mrb[3].mxu0 }
 0x31d   :  { %433 = vtanh.f32 %v305_v33 }
 0x327   :  { %v434_v36 = vpop.eup %433 }
 0x328   :  { %v316_v37 = vmul.f32 %v434_v36, %v378_v35 }
 0x32a   :  { %v317_v38 = vsel %vm139_vm2, %v316_v37, 0.0 }
 0x32b   :  { %318 = vadd.xlane.f32.xlu1 %v317_v38 }
 0x33c   :  { %334 = vrot.lane.b32.xlu1 %v210_v22, %s489_s3 }
 0x33d   :  { %448 = shalt.err (!%p445_p4)
}
 0x33e   :  { %s449_s8 = scalar_lea.hbm %s641_s10, 128 }
 0x33f   :  { %p450_p5 = scmp.ne.s32.totalorder %s641_s10, %s449_s8  ;;  %p453_p6 = scmp.lt.u32.totalorder %s449_s8, %s641_s10 }
 0x341   :  { %p455_p7 = pnand %p453_p6, %p450_p5 }
 0x343   :  { %458 = shalt.err (!%p455_p7)
}
 0x344   :  { %349 = dma.vmem_to_hbm [thread:$0]  %s347_s26, 128, %s641_s10, [#allocation4]   ;;  %v379_v39 = vld [vmem:[#allocation2] ss:$0 sm:$0xff] }
 0x345   :  { %s491_s15 = smov [#allocation5]  }
 0x346   :  { %s356_s16 = sshll.u32 %s491_s15, 4  ;;  %s357_s16 = int_to_ptr.vmem [resolvable:$true] %s356_s16 }
 0x347   :  { %s459_s0 = scalar_lea.vmem %s357_s16, 128  ;;  %p464_p9 = scmp.lt.s32.totalorder %s357_s16, %s357_s16 }
 0x348   :  { %p460_p8 = scmp.ne.s32.totalorder %s357_s16, %s459_s0  ;;  %p465_p10 = scmp.lt.s32.totalorder %s459_s0, %s459_s0 }
 0x34a   :  { %p466_p11 = por %p465_p10, %p464_p9 }
 0x34c   :  { %p467_p12 = pnand %p466_p11, %p460_p8 }
 0x3b8   :  { %v319_v40 = vpop.xlane.xlu1 %318 }
 0x3b9   :  { %v327_v41 = vadd.f32 %v379_v39, %v319_v40 }
 0x3bb   :  { %v328_v42 = vmul.f32 0.5, %v327_v41 }
 0x3bc   :  { %v335_v43 = vpop.permute.xlu1 %334 }
 0x3bd   :  { %435 = vtanh.f32 %v328_v42  ;;  %337 = vst.msk [vmem:[#allocation5] sm:$0xff] %vm234_vm3, %v335_v43 }
 0x3be   :  { %470 = shalt.err (!%p467_p12)
}
 0x3bf   :  { %s471_s18 = scalar_lea.hbm %s642_s11, 128 }
 0x3c0   :  { %p472_p13 = scmp.ne.s32.totalorder %s642_s11, %s471_s18  ;;  %p475_p0 = scmp.lt.u32.totalorder %s471_s18, %s642_s11 }
 0x3c2   :  { %p477_p1 = pnand %p475_p0, %p472_p13 }
 0x3c4   :  { %480 = shalt.err (!%p477_p1)
}
 0x3c5   :  { %359 = dma.vmem_to_hbm [thread:$0]  %s357_s16, 128, %s642_s11, [#allocation6]   ;;  %vm338_vm4 = vcmask 7168  }
 0x3c7   :  { %v436_v44 = vpop.eup %435 }
 0x3c8   :  { %v330_v45 = vadd.f32 1.0, %v436_v44 }
 0x3ca   :  { %v331_v46 = vmul.f32 0.5, %v330_v45 }
 0x3cc   :  { %339 = vst.msk [vmem:[%s643_s12] sm:$0xff] %vm338_vm4, %v331_v46 }
 0x3cd   :  { %481 = dma.done.wait [#allocation4], 128  }
 0x3ce   :  { %482 = vsyncadd [#allocation4], 4294967168 }
 0x3cf   :  { %483 = dma.done.wait [#allocation6], 128  }
 0x3d0   :  { %484 = vsyncadd [#allocation6], 4294967168 }
 0x3d1   :  { %370 = vsyncpa [#allocation4], 1 }
 0x3d2   :  { %371 = vsyncpa [#allocation6], 1 }

</bundles_post_ra>
